<compile_context>
chip_gen: v7x
topology: tpu7x:2x2x1
jax: 0.10.0
libtpu: 0.0.40
codegen_flags: <defaults>
</compile_context>

<pallas_src>
import functools
import math

import jax
import jax.numpy as jnp
import numpy as np
from jax.experimental import pallas as pl
from jax.experimental.pallas import tpu as pltpu


def make_positional_encoding_table(d_model, max_len=1024, scale_factor=1.0):
    """Equivalent of the module's __init__-time `pe` buffer: (max_len, 1, D)."""
    position = np.arange(max_len, dtype=np.float32)[:, None]
    div_term = np.exp(np.arange(0, d_model, 2, dtype=np.float32)
                      * (-math.log(10000.0) / d_model))
    pe = np.zeros((max_len, d_model), dtype=np.float32)
    pe[:, 0::2] = np.sin(position * div_term)
    pe[:, 1::2] = np.cos(position * div_term)
    pe = scale_factor * pe[:, None, :]            # (max_len, 1, d_model)
    return jnp.asarray(pe, dtype=jnp.float32)


# ------------------------------ kernels ------------------------------

def _pe_add_kernel(x_ref, pe_ref, o_ref):
    # (TS, B, D) + (TS, 1, D): pe broadcast over batch on the sublane axis.
    y = x_ref[...].astype(jnp.float32) + pe_ref[...].astype(jnp.float32)
    o_ref[...] = y.astype(o_ref.dtype)


def _pe_add_dropout_kernel(x_ref, pe_ref, u_ref, o_ref, *, drop_p):
    # Fused add + dropout: keep iff u >= p, scale kept values by 1/(1-p).
    y = x_ref[...].astype(jnp.float32) + pe_ref[...].astype(jnp.float32)
    keep = u_ref[...] >= jnp.float32(drop_p)
    inv_keep = jnp.float32(1.0 / (1.0 - drop_p))
    o_ref[...] = jnp.where(keep, y * inv_keep, 0.0).astype(o_ref.dtype)


# ------------------------------ wrapper ------------------------------

def _default_block_seq(S, B, D):
    # ~2 MiB budget for the f32 x block in VMEM (batch padded to sublane = 8);
    # with double-buffered inputs + output this stays far below 64 MiB (v7x).
    padded_b = -(-B // 8) * 8
    per_step_bytes = padded_b * D * 4
    return max(1, min(S, (2 << 20) // per_step_bytes))


def fixed_positional_encoding(x, pe, *, dropout=0.1, training=False,
                              rng_key=None, block_seq=None):
    """x: [S, B, D]; pe: [max_len, 1, D].  Returns dropout(x + pe[:S])."""
    S, B, D = x.shape
    max_len = pe.shape[0]
    assert S <= max_len and pe.shape == (max_len, 1, D), (x.shape, pe.shape)

    if block_seq is None:
        block_seq = _default_block_seq(S, B, D)
    block_seq = min(block_seq, S)
    grid = (pl.cdiv(S, block_seq),)

    x_spec = pl.BlockSpec((block_seq, B, D), lambda i: (i, 0, 0))
    pe_spec = pl.BlockSpec((block_seq, 1, D), lambda i: (i, 0, 0))
    out_shape = jax.ShapeDtypeStruct((S, B, D), x.dtype)
    cparams = pltpu.CompilerParams(dimension_semantics=("parallel",))

    use_dropout = training and dropout > 0.0
    if use_dropout:
        if rng_key is None:
            raise ValueError("training=True with dropout>0 requires rng_key")
        # TODO(synk): generate the mask in-kernel with pltpu.prng_random_bits
        # (rank-3 draw) to remove this extra uniform-tensor HBM read.
        u = jax.random.uniform(rng_key, (S, B, D), jnp.float32)
        kernel = functools.partial(_pe_add_dropout_kernel,
                                   drop_p=float(dropout))
        grid_spec = pltpu.PrefetchScalarGridSpec(
            num_scalar_prefetch=0, grid=grid,
            in_specs=[x_spec, pe_spec, x_spec],
            out_specs=x_spec)
        return pl.pallas_call(kernel, out_shape=out_shape, grid_spec=grid_spec,
                              compiler_params=cparams)(x, pe, u)

    grid_spec = pltpu.PrefetchScalarGridSpec(
        num_scalar_prefetch=0, grid=grid,
        in_specs=[x_spec, pe_spec], out_specs=x_spec)
    return pl.pallas_call(_pe_add_kernel, out_shape=out_shape,
                          grid_spec=grid_spec,
                          compiler_params=cparams)(x, pe)


# ------------------------------ demo / check ------------------------------

if __name__ == "__main__":
    S, B, D = 16, 2, 128          # [seq, batch, embed] — the module's layout
    max_len, scale_factor, drop_p = 1024, 1.0, 0.1

    key = jax.random.PRNGKey(0)
    kx, kd = jax.random.split(key)
    x = jax.random.normal(kx, (S, B, D), dtype=jnp.float32)
    pe = make_positional_encoding_table(D, max_len=max_len,
                                        scale_factor=scale_factor)

    ref = x + pe[:S]              # eval-mode reference (dropout is identity)

    # 1) eval mode, single sequence tile
    out = jax.block_until_ready(
        fixed_positional_encoding(x, pe, dropout=drop_p, training=False))
    assert out.shape == (S, B, D) and out.dtype == x.dtype
    err = float(jnp.max(jnp.abs(out - ref)))
    assert jnp.allclose(out, ref, rtol=1e-6, atol=1e-6), f"max abs err {err}"

    # 2) eval mode, tiled sequence grid (exercises the multi-step pipeline)
    out_tiled = jax.block_until_ready(
        fixed_positional_encoding(x, pe, dropout=drop_p, training=False,
                                  block_seq=8))
    assert jnp.allclose(out_tiled, ref, rtol=1e-6, atol=1e-6)

    # 3) bf16 activations: HBM traffic halves, compute stays f32 in-kernel
    out_bf16 = jax.block_until_ready(
        fixed_positional_encoding(x.astype(jnp.bfloat16), pe,
                                  dropout=drop_p, training=False))
    assert out_bf16.dtype == jnp.bfloat16
    assert jnp.allclose(out_bf16.astype(jnp.float32), ref,
                        rtol=2e-2, atol=2e-2)

    # 4) training mode: fused dropout mask + 1/(1-p) scaling inside the kernel
    out_tr = jax.block_until_ready(
        fixed_positional_encoding(x, pe, dropout=drop_p, training=True,
                                  rng_key=kd))
    u = jax.random.uniform(kd, (S, B, D), jnp.float32)
    ref_tr = jnp.where(u >= drop_p, ref * jnp.float32(1.0 / (1.0 - drop_p)),
                       0.0)
    assert jnp.allclose(out_tr, ref_tr, rtol=1e-6, atol=1e-6)

    print("KERNEL_OK")
</pallas_src>

<mosaic_0001>
module attributes {stable_mosaic.version = 11 : i64} {
  func.func @_pe_add_kernel(%arg0: i32, %arg1: memref<16x2x128xf32, #tpu.memory_space<vmem>>, %arg2: memref<16x1x128xf32, #tpu.memory_space<vmem>>, %arg3: memref<16x2x128xf32, #tpu.memory_space<vmem>>) attributes {dimension_semantics = [#tpu.dimension_semantics<parallel>], iteration_bounds = array<i64: 1>, scalar_prefetch = 0 : i64, scratch_operands = 0 : i64, tpu.core_type = #tpu.core_type<tc>, window_params = [{transform_indices = @transform_0, window_bounds = array<i64: 16, 2, 128>}, {transform_indices = @transform_1, window_bounds = array<i64: 16, 1, 128>}, {transform_indices = @transform_2, window_bounds = array<i64: 16, 2, 128>}]} {
    %c0 = arith.constant 0 : index
    %c0_0 = arith.constant 0 : index
    %c0_1 = arith.constant 0 : index
    %0 = vector.load %arg1[%c0, %c0_0, %c0_1] : memref<16x2x128xf32, #tpu.memory_space<vmem>>, vector<16x2x128xf32>
    %c0_2 = arith.constant 0 : index
    %c0_3 = arith.constant 0 : index
    %c0_4 = arith.constant 0 : index
    %1 = vector.load %arg2[%c0_2, %c0_3, %c0_4] : memref<16x1x128xf32, #tpu.memory_space<vmem>>, vector<16x1x128xf32>
    %2 = vector.broadcast %1 : vector<16x1x128xf32> to vector<16x2x128xf32>
    %3 = arith.addf %0, %2 : vector<16x2x128xf32>
    %c0_5 = arith.constant 0 : index
    %c0_6 = arith.constant 0 : index
    %c0_7 = arith.constant 0 : index
    %4 = vector.load %arg3[%c0_5, %c0_6, %c0_7] : memref<16x2x128xf32, #tpu.memory_space<vmem>>, vector<16x2x128xf32>
    tpu.vector_store %arg3[%c0_5, %c0_6, %c0_7], %3 {strides = array<i32>} : memref<16x2x128xf32, #tpu.memory_space<vmem>>, vector<16x2x128xf32>,
    return
  }
  func.func @transform_0(%arg0: i32) -> (i32, i32, i32) {
    %c0_i32 = arith.constant 0 : i32
    %c0_i32_0 = arith.constant 0 : i32
    %c0_i32_1 = arith.constant 0 : i32
    return %arg0, %c0_i32, %c0_i32_0 : i32, i32, i32
  }
  func.func @transform_1(%arg0: i32) -> (i32, i32, i32) {
    %c0_i32 = arith.constant 0 : i32
    %c0_i32_0 = arith.constant 0 : i32
    %c0_i32_1 = arith.constant 0 : i32
    return %arg0, %c0_i32, %c0_i32_0 : i32, i32, i32
  }
  func.func @transform_2(%arg0: i32) -> (i32, i32, i32) {
    %c0_i32 = arith.constant 0 : i32
    %c0_i32_0 = arith.constant 0 : i32
    %c0_i32_1 = arith.constant 0 : i32
    return %arg0, %c0_i32, %c0_i32_0 : i32, i32, i32
  }
}

</mosaic_0001>

<bundles_post_ra>
// kernel: tpu_custom_call.1
= control target key start
LH: loop header
LB: loop body
LE: loop exit
PB: predicated region body
PF: predicated region fallthrough
CT: control target
= control target key end

     0   :  { %7 = vsyncpa [#allocation3], 0  ;;  %s383_s0 = inlined_call_operand.hbm [shape: f32[16,2,128], index: 0, kind: input, shape index: {}]   ;;  %s384_s1 = inlined_call_operand.hbm [shape: f32[1024,1,128], index: 1, kind: input, shape index: {}]   ;;  %s385_s2 = inlined_call_operand.hbm [shape: f32[16,2,128], index: 2, kind: output, shape index: {}]  }
   0x1   :  { %8 = vsyncpa [#allocation6], 0 }
   0x2   :  { %9 = vsyncpa [#allocation4], 0  ;;  %s313_s9 = smov [#allocation2]   ;;  %s241_s13 = scalar_lea.hbm %s383_s0, 512 }
   0x3   :  { %s15_s10 = sshll.u32 %s313_s9, 4  ;;  %p242_p0 = scmp.ne.s32.totalorder %s383_s0, %s241_s13  ;;  %s16_s10 = int_to_ptr.vmem [resolvable:$true] %s15_s10 }
   0x4   :  { %p245_p1 = scmp.lt.u32.totalorder %s241_s13, %s383_s0 }
   0x6   :  { %p247_p2 = pnand %p245_p1, %p242_p0 }
   0x8   :  { %250 = shalt.err (!%p247_p2)
}
   0x9   :  { %s251_s18 = scalar_lea.vmem %s16_s10, 512  ;;  %p256_p4 = scmp.lt.s32.totalorder %s16_s10, %s16_s10 }
   0xa   :  { %p252_p3 = scmp.ne.s32.totalorder %s16_s10, %s251_s18  ;;  %p257_p5 = scmp.lt.s32.totalorder %s251_s18, %s251_s18 }
   0xc   :  { %p258_p6 = por %p257_p5, %p256_p4 }
   0xe   :  { %p259_p7 = pnand %p258_p6, %p252_p3 }
  0x10   :  { %262 = shalt.err (!%p259_p7)
}
  0x11   :  { %s314_s19 = smov 32   ;;  %s315_s20 = smov 2  }
  0x12   :  { %21 = dma.hbm_to_vmem [thread:$0]  %s383_s0, 512, %s16_s10, [#allocation3], %s314_s19, %s314_s19, %s315_s20  }
  0x13   :  { %s316_s23 = smov [#allocation5]   ;;  %s263_s27 = scalar_lea.hbm %s384_s1, 256 }
  0x14   :  { %s27_s24 = sshll.u32 %s316_s23, 4  ;;  %p264_p8 = scmp.ne.s32.totalorder %s384_s1, %s263_s27  ;;  %s28_s24 = int_to_ptr.vmem [resolvable:$true] %s27_s24 }
  0x15   :  { %s265_s4 = scalar_lea.hbm %s384_s1, 16384  ;;  %p267_p10 = scmp.lt.u32.totalorder %s263_s27, %s384_s1 }
  0x16   :  { %p266_p9 = scmp.lt.u32.totalorder %s265_s4, %s263_s27 }
  0x18   :  { %p268_p11 = por %p267_p10, %p266_p9 }
  0x1a   :  { %p269_p12 = pnand %p268_p11, %p264_p8 }
  0x1c   :  { %272 = shalt.err (!%p269_p12)
}
  0x1d   :  { %s273_s0 = scalar_lea.vmem %s28_s24, 256  ;;  %p278_p0 = scmp.lt.s32.totalorder %s28_s24, %s28_s24 }
  0x1e   :  { %p274_p13 = scmp.ne.s32.totalorder %s28_s24, %s273_s0  ;;  %p279_p1 = scmp.lt.s32.totalorder %s273_s0, %s273_s0 }
  0x20   :  { %p280_p2 = por %p279_p1, %p278_p0 }
  0x22   :  { %p281_p3 = pnand %p280_p2, %p274_p13 }
  0x24   :  { %284 = shalt.err (!%p281_p3)
}
  0x25   :  { %s317_s7 = smov 16   ;;  %s318_s8 = smov 1  }
  0x26   :  { %33 = dma.hbm_to_vmem [thread:$0]  %s384_s1, 256, %s28_s24, [#allocation6], %s317_s7, %s317_s7, %s318_s8  }
  0x27   :  { %307 = dma.done.wait [#allocation3], 512  }
  0x28   :  { %308 = vsyncadd [#allocation3], 4294966784 }
  0x29   :  { %309 = dma.done.wait [#allocation6], 256  }
  0x2a   :  { %310 = vsyncadd [#allocation6], 4294967040  ;;  %s319_s11 = smov [#allocation7]   ;;  %v40_v0 = vld [vmem:[#allocation2] sm:$0x3] }
  0x2b   :  { %s365_s12 = sshll.u32 %s319_s11, 4  ;;  %v218_v1 = vld [vmem:[#allocation5] ss:$0 sm:$0xff]  ;;  %v41_v2 = vld [vmem:[#allocation2 + $0x2] sm:$0x3]  ;;  %s206_s12 = int_to_ptr.vmem [resolvable:$true] %s365_s12 }
  0x2c   :  { %v168_v3 = vadd.f32 %v218_v1, %v40_v0  ;;  %v219_v4 = vld [vmem:[#allocation5 + $0x1] ss:$0 sm:$0xff]  ;;  %v42_v5 = vld [vmem:[#allocation2 + $0x4] sm:$0x3]  ;;  %v220_v6 = vld [vmem:[#allocation5 + $0x2] ss:$0 sm:$0xff]  ;;  %p290_p5 = scmp.lt.s32.totalorder %s206_s12, %s206_s12 }
  0x2d   :  { %v169_v7 = vadd.f32 %v219_v4, %v41_v2  ;;  %v170_v8 = vadd.f32 %v220_v6, %v42_v5  ;;  %v43_v9 = vld [vmem:[#allocation2 + $0x6] sm:$0x3]  ;;  %v221_v10 = vld [vmem:[#allocation5 + $0x3] ss:$0 sm:$0xff]  ;;  %v44_v11 = vld [vmem:[#allocation2 + $0x8] sm:$0x3] }
  0x2e   :  { %184 = vst [vmem:[#allocation7] sm:$0x3] %v168_v3  ;;  %v171_v12 = vadd.f32 %v221_v10, %v43_v9  ;;  %v222_v13 = vld [vmem:[#allocation5 + $0x4] ss:$0 sm:$0xff]  ;;  %v45_v14 = vld [vmem:[#allocation2 + $0xa] sm:$0x3] }
  0x2f   :  { %v223_v15 = vld [vmem:[#allocation5 + $0x5] ss:$0 sm:$0xff]  ;;  %185 = vst [vmem:[#allocation7 + $0x2] sm:$0x3] %v169_v7  ;;  %186 = vst [vmem:[#allocation7 + $0x4] sm:$0x3] %v170_v8  ;;  %v172_v16 = vadd.f32 %v222_v13, %v44_v11 }
  0x30   :  { %v173_v17 = vadd.f32 %v223_v15, %v45_v14  ;;  %v46_v18 = vld [vmem:[#allocation2 + $0xc] sm:$0x3]  ;;  %v224_v19 = vld [vmem:[#allocation5 + $0x6] ss:$0 sm:$0xff]  ;;  %v47_v20 = vld [vmem:[#allocation2 + $0xe] sm:$0x3] }
  0x31   :  { %187 = vst [vmem:[#allocation7 + $0x6] sm:$0x3] %v171_v12  ;;  %v174_v21 = vadd.f32 %v224_v19, %v46_v18  ;;  %v225_v22 = vld [vmem:[#allocation5 + $0x7] ss:$0 sm:$0xff]  ;;  %v48_v23 = vld [vmem:[#allocation2 + $0x10] sm:$0x3] }
  0x32   :  { %v226_v24 = vld [vmem:[#allocation5 + $0x8] ss:$0 sm:$0xff]  ;;  %188 = vst [vmem:[#allocation7 + $0x8] sm:$0x3] %v172_v16  ;;  %189 = vst [vmem:[#allocation7 + $0xa] sm:$0x3] %v173_v17  ;;  %v175_v25 = vadd.f32 %v225_v22, %v47_v20 }
  0x33   :  { %v176_v26 = vadd.f32 %v226_v24, %v48_v23  ;;  %v49_v27 = vld [vmem:[#allocation2 + $0x12] sm:$0x3]  ;;  %v227_v28 = vld [vmem:[#allocation5 + $0x9] ss:$0 sm:$0xff]  ;;  %v50_v29 = vld [vmem:[#allocation2 + $0x14] sm:$0x3] }
  0x34   :  { %190 = vst [vmem:[#allocation7 + $0xc] sm:$0x3] %v174_v21  ;;  %v177_v30 = vadd.f32 %v227_v28, %v49_v27  ;;  %v228_v31 = vld [vmem:[#allocation5 + $0xa] ss:$0 sm:$0xff]  ;;  %v51_v32 = vld [vmem:[#allocation2 + $0x16] sm:$0x3] }
  0x35   :  { %v229_v33 = vld [vmem:[#allocation5 + $0xb] ss:$0 sm:$0xff]  ;;  %191 = vst [vmem:[#allocation7 + $0xe] sm:$0x3] %v175_v25  ;;  %192 = vst [vmem:[#allocation7 + $0x10] sm:$0x3] %v176_v26  ;;  %v178_v34 = vadd.f32 %v228_v31, %v50_v29 }
  0x36   :  { %v179_v35 = vadd.f32 %v229_v33, %v51_v32  ;;  %v52_v36 = vld [vmem:[#allocation2 + $0x18] sm:$0x3]  ;;  %v230_v37 = vld [vmem:[#allocation5 + $0xc] ss:$0 sm:$0xff]  ;;  %v53_v38 = vld [vmem:[#allocation2 + $0x1a] sm:$0x3] }
  0x37   :  { %193 = vst [vmem:[#allocation7 + $0x12] sm:$0x3] %v177_v30  ;;  %v180_v39 = vadd.f32 %v230_v37, %v52_v36  ;;  %v231_v40 = vld [vmem:[#allocation5 + $0xd] ss:$0 sm:$0xff]  ;;  %v54_v41 = vld [vmem:[#allocation2 + $0x1c] sm:$0x3] }
  0x38   :  { %v232_v42 = vld [vmem:[#allocation5 + $0xe] ss:$0 sm:$0xff]  ;;  %194 = vst [vmem:[#allocation7 + $0x14] sm:$0x3] %v178_v34  ;;  %195 = vst [vmem:[#allocation7 + $0x16] sm:$0x3] %v179_v35  ;;  %v181_v43 = vadd.f32 %v231_v40, %v53_v38 }
  0x39   :  { %v182_v44 = vadd.f32 %v232_v42, %v54_v41  ;;  %v55_v45 = vld [vmem:[#allocation2 + $0x1e] sm:$0x3]  ;;  %v233_v46 = vld [vmem:[#allocation5 + $0xf] ss:$0 sm:$0xff]  ;;  %196 = vst [vmem:[#allocation7 + $0x18] sm:$0x3] %v180_v39 }
  0x3a   :  { %v183_v47 = vadd.f32 %v233_v46, %v55_v45  ;;  %197 = vst [vmem:[#allocation7 + $0x1a] sm:$0x3] %v181_v43  ;;  %s285_s1 = scalar_lea.vmem %s206_s12, 512 }
  0x3b   :  { %198 = vst [vmem:[#allocation7 + $0x1c] sm:$0x3] %v182_v44  ;;  %p286_p4 = scmp.ne.s32.totalorder %s206_s12, %s285_s1  ;;  %p291_p6 = scmp.lt.s32.totalorder %s285_s1, %s285_s1 }
  0x3c   :  { %199 = vst [vmem:[#allocation7 + $0x1e] sm:$0x3] %v183_v47 }
  0x3d   :  { %p292_p7 = por %p291_p6, %p290_p5 }
  0x3f   :  { %p293_p8 = pnand %p292_p7, %p286_p4 }
  0x41   :  { %296 = shalt.err (!%p293_p8)
}
  0x42   :  { %s297_s15 = scalar_lea.hbm %s385_s2, 512 }
  0x43   :  { %p298_p9 = scmp.ne.s32.totalorder %s385_s2, %s297_s15  ;;  %p301_p10 = scmp.lt.u32.totalorder %s297_s15, %s385_s2 }
  0x45   :  { %p303_p11 = pnand %p301_p10, %p298_p9 }
  0x47   :  { %306 = shalt.err (!%p303_p11)
}
  0x48   :  { %211 = dma.vmem_to_hbm [thread:$0]  %s206_s12, 512, %s385_s2, [#allocation4], %s314_s19, %s314_s19, %s315_s20  }
  0x49   :  { %311 = dma.done.wait [#allocation4], 512  }
  0x4a   :  { %312 = vsyncadd [#allocation4], 4294966784 }
  0x4b   :  { %215 = vsyncpa [#allocation3], 1 }
  0x4c   :  { %216 = vsyncpa [#allocation6], 1 }
  0x4d   :  { %217 = vsyncpa [#allocation4], 1 }

</bundles_post_ra>
